<compile_context>
chip_gen: v7x
topology: tpu7x:2x2x1
jax: 0.10.0
libtpu: 0.0.40
codegen_flags: <defaults>
</compile_context>

<pallas_src>
import functools

import jax
import jax.numpy as jnp
from jax.experimental import pallas as pl
from jax.experimental.pallas import tpu as pltpu

_LANES = 128
_SUBLANES = 8


def _round_up(x: int, m: int) -> int:
    return (x + m - 1) // m * m


def _penalty_kernel(pred_ref, out_ref, acc_ref, *, mB: int, block_rows: int,
                    n_blocks: int, blocks_per_split: int):
    c = pl.program_id(0)                  # core-split index ("parallel")
    i = pl.program_id(1)                  # row-block index within split ("arbitrary")
    tile = block_rows * _LANES
    g = c * blocks_per_split + i          # global row-block index
    block_start = g * tile                # global flat element offset of this block

    # (Re)initialise the VPU accumulator at the start of each split's chain.
    @pl.when(i == 0)
    def _init():
        acc_ref[...] = jnp.full(acc_ref.shape, -jnp.inf, acc_ref.dtype)

    is_valid = g < n_blocks               # skip duplicate/padding grid steps
    is_bulk = block_start + tile <= mB    # block entirely inside the |x| - 1 zone

    @pl.when(is_bulk)
    def _bulk():
        # abs and max are exact in the input dtype; only the tiny (8,128)
        # partial result is cast to f32 -> no full-block f32 temporaries,
        # pure VPU work that hides under the streaming input DMA.
        xg = pred_ref[...].reshape(block_rows // _SUBLANES, _SUBLANES, _LANES)
        part = jnp.max(jnp.abs(xg), axis=0).astype(jnp.float32) - 1.0
        acc_ref[...] = jnp.maximum(acc_ref[...], part)

    @pl.when(jnp.logical_and(is_valid, jnp.logical_not(is_bulk)))
    def _boundary():
        # At most two blocks per call take this path: the one(s) containing
        # indices mB / mB+1, lane padding and the ragged Pallas tail rows.
        # Garbage (even NaN) in out-of-range rows is masked to -inf by the
        # selects below, so it never reaches the max.
        x = pred_ref[...].astype(jnp.float32)
        ridx = jax.lax.broadcasted_iota(jnp.int32, x.shape, 0)
        lidx = jax.lax.broadcasted_iota(jnp.int32, x.shape, 1)
        idx = block_start + ridx * _LANES + lidx      # global flat index
        hinge = jnp.where(
            idx < mB, jnp.abs(x) - 1.0,
            jnp.where(idx == mB, x - 1.0,
                      jnp.where(idx == mB + 1, x, -jnp.inf)))
        part = jnp.max(
            hinge.reshape(block_rows // _SUBLANES, _SUBLANES, _LANES), axis=0)
        acc_ref[...] = jnp.maximum(acc_ref[...], part)

    # Single cross-sublane + cross-lane reduce and scalar store per split.
    @pl.when(i == pl.num_programs(1) - 1)
    def _finalize():
        row = jnp.max(acc_ref[...], axis=0, keepdims=True)          # (1, 128)
        out_ref[...] = jnp.max(row, axis=1, keepdims=True).reshape(1, 1, 1)


def penalty(pred: jax.Array, mB: int, *,
            target_block_bytes: int = 2 * 1024 * 1024) -> jax.Array:
    """JAX/Pallas equivalent of Penalty().forward(pred). Returns an f32 scalar."""
    n = pred.shape[0]
    assert n == mB + 2, "pred must have length mB + 2"
    itemsize = jnp.dtype(pred.dtype).itemsize

    # ---- lane-dense (rows, 128) view of pred; zero-copy when n % 128 == 0 ----
    rows = pl.cdiv(n, _LANES)
    padded_len = rows * _LANES
    if padded_len == n:
        flat = pred                       # reshape below is a bitcast, no HBM copy
    else:
        # Only remaining HBM copy (unavoidable for a non-128-multiple length);
        # the (<= 127) pad values are masked to -inf in-kernel.
        flat = jnp.pad(pred, (0, padded_len - n))
    pred2d = flat.reshape(rows, _LANES)

    # ---- dtype-aware block sizing: ~target_block_bytes of HBM traffic/step ----
    sub = max(_SUBLANES, 32 // itemsize)          # 8 (f32) / 16 (bf16) / 32 (int8)
    target_rows = max(sub, (target_block_bytes // (_LANES * itemsize)) // sub * sub)
    block_rows = min(target_rows, _round_up(rows, sub))
    n_blocks = pl.cdiv(rows, block_rows)

    # ---- split the row-block range over both TensorCores (helps v7x only) ----
    n_splits = min(2, n_blocks)
    blocks_per_split = pl.cdiv(n_blocks, n_splits)

    def in_map(c, i):
        # Clamp so padding grid steps (g >= n_blocks) simply re-read the last
        # valid block (skipped in-kernel) instead of requesting an
        # out-of-range window.
        return (jnp.minimum(c * blocks_per_split + i, n_blocks - 1), 0)

    out = pl.pallas_call(
        functools.partial(_penalty_kernel, mB=mB, block_rows=block_rows,
                          n_blocks=n_blocks, blocks_per_split=blocks_per_split),
        out_shape=jax.ShapeDtypeStruct((n_splits, 1, 1), jnp.float32),
        grid=(n_splits, blocks_per_split),
        in_specs=[pl.BlockSpec((block_rows, _LANES), in_map)],
        out_specs=pl.BlockSpec((1, 1, 1), lambda c, i: (c, 0, 0)),
        scratch_shapes=[pltpu.VMEM((_SUBLANES, _LANES), jnp.float32)],
        compiler_params=pltpu.CompilerParams(
            dimension_semantics=("parallel", "arbitrary"),
            vmem_limit_bytes=32 * 1024 * 1024),
    )(pred2d)
    return jnp.max(out)           # reduce the per-split partial maxima


def _reference(pred: jax.Array, mB: int) -> jax.Array:
    h1 = jnp.abs(pred[0:mB].astype(jnp.float32)) - 1.0
    h2 = pred[mB:mB + 1].astype(jnp.float32) - 1.0
    h3 = pred[mB + 1:mB + 2].astype(jnp.float32)
    return jnp.max(jnp.concatenate([h1, h2, h3], axis=0))


if __name__ == "__main__":
    key = jax.random.PRNGKey(0)

    # (mB, target_block_bytes override):
    #   * n = 10     : tiny single block, lane padding + ragged rows masked
    #   * n = 2560   : 128-multiple (zero-copy), 3 blocks over 2 splits,
    #                  exercises the invalid-block skip on split 1
    #   * n = 2049   : lane padding + ragged last Pallas block, mB in a
    #                  non-final block
    #   * n = 262144 : zero-copy path with one default-sized (~1 MiB) block
    cases = [
        (8, None),
        (2558, 4096),
        (2047, 4096),
        (262142, None),
    ]
    for t, (mB, tbb) in enumerate(cases):
        k = jax.random.fold_in(key, t)
        pred = jax.random.normal(k, (mB + 2,), dtype=jnp.float32) * 2.0
        kwargs = {} if tbb is None else {"target_block_bytes": tbb}
        got = penalty(pred, mB, **kwargs)
        jax.block_until_ready(got)
        want = _reference(pred, mB)
        assert jnp.allclose(got, want, atol=1e-6), (mB, got, want)

    print("KERNEL_OK")
</pallas_src>

<mosaic_0001>
module attributes {stable_mosaic.version = 11 : i64} {
  func.func @_penalty_kernel(%arg0: i32, %arg1: i32, %arg2: memref<8x128xf32, #tpu.memory_space<vmem>>, %arg3: memref<1x1x1xf32, #tpu.memory_space<vmem>>, %arg4: memref<8x128xf32, #tpu.memory_space<vmem>>) attributes {dimension_semantics = [#tpu.dimension_semantics<parallel>, #tpu.dimension_semantics<arbitrary>], iteration_bounds = array<i64: 1, 1>, scalar_prefetch = 0 : i64, scratch_operands = 1 : i64, tpu.core_type = #tpu.core_type<tc>, window_params = [{transform_indices = @transform_0, window_bounds = array<i64: 8, 128>}, {transform_indices = @transform_1, window_bounds = array<i64: 1, 1, 1>}]} {
    %c1_i32 = arith.constant 1 : i32
    %0 = arith.muli %arg0, %c1_i32 : i32
    %1 = arith.addi %0, %arg1 : i32
    %c1024_i32 = arith.constant 1024 : i32
    %2 = arith.muli %1, %c1024_i32 : i32
    %c0_i32 = arith.constant 0 : i32
    %3 = arith.cmpi eq, %arg1, %c0_i32 : i32
    %4 = arith.extui %3 : i1 to i32
    %c0_i32_0 = arith.constant 0 : i32
    %5 = arith.cmpi ne, %4, %c0_i32_0 : i32
    scf.if %5 {
      %cst = arith.constant 0xFF800000 : f32
      %18 = vector.broadcast %cst : f32 to vector<8x128xf32>
      %c0 = arith.constant 0 : index
      %c0_7 = arith.constant 0 : index
      %19 = vector.load %arg4[%c0, %c0_7] : memref<8x128xf32, #tpu.memory_space<vmem>>, vector<8x128xf32>
      tpu.vector_store %arg4[%c0, %c0_7], %18 {strides = array<i32>} : memref<8x128xf32, #tpu.memory_space<vmem>>, vector<8x128xf32>,
    } else {
    }
    %c1_i32_1 = arith.constant 1 : i32
    %6 = arith.cmpi slt, %1, %c1_i32_1 : i32
    %c1024_i32_2 = arith.constant 1024 : i32
    %7 = arith.addi %2, %c1024_i32_2 : i32
    %c8_i32 = arith.constant 8 : i32
    %8 = arith.cmpi sle, %7, %c8_i32 : i32
    %9 = arith.extui %8 : i1 to i32
    %c0_i32_3 = arith.constant 0 : i32
    %10 = arith.cmpi ne, %9, %c0_i32_3 : i32
    scf.if %10 {
      %c0 = arith.constant 0 : index
      %c0_7 = arith.constant 0 : index
      %18 = vector.load %arg2[%c0, %c0_7] : memref<8x128xf32, #tpu.memory_space<vmem>>, vector<8x128xf32>
      %19 = vector.shape_cast %18 : vector<8x128xf32> to vector<1x8x128xf32>
      %20 = math.absf %19 : vector<1x8x128xf32>
      %cst = arith.constant dense<0xFF800000> : vector<8x128xf32>
      %21 = vector.multi_reduction <maximumf>, %20, %cst [0] : vector<1x8x128xf32> to vector<8x128xf32>
      %cst_8 = arith.constant 1.000000e+00 : f32
      %22 = vector.broadcast %cst_8 : f32 to vector<8x128xf32>
      %23 = arith.subf %21, %22 : vector<8x128xf32>
      %c0_9 = arith.constant 0 : index
      %c0_10 = arith.constant 0 : index
      %24 = vector.load %arg4[%c0_9, %c0_10] : memref<8x128xf32, #tpu.memory_space<vmem>>, vector<8x128xf32>
      %25 = arith.maximumf %24, %23 : vector<8x128xf32>
      %c0_11 = arith.constant 0 : index
      %c0_12 = arith.constant 0 : index
      %26 = vector.load %arg4[%c0_11, %c0_12] : memref<8x128xf32, #tpu.memory_space<vmem>>, vector<8x128xf32>
      tpu.vector_store %arg4[%c0_11, %c0_12], %25 {strides = array<i32>} : memref<8x128xf32, #tpu.memory_space<vmem>>, vector<8x128xf32>,
    } else {
    }
    %true = arith.constant true
    %11 = arith.xori %8, %true : i1
    %12 = arith.andi %6, %11 : i1
    %13 = arith.extui %12 : i1 to i32
    %c0_i32_4 = arith.constant 0 : i32
    %14 = arith.cmpi ne, %13, %c0_i32_4 : i32
    scf.if %14 {
      %c0 = arith.constant 0 : index
      %c0_7 = arith.constant 0 : index
      %18 = vector.load %arg2[%c0, %c0_7] : memref<8x128xf32, #tpu.memory_space<vmem>>, vector<8x128xf32>
      %19 = tpu.iota {dimensions = array<i32: 0>} : vector<8x128xi32>
      %20 = tpu.iota {dimensions = array<i32: 1>} : vector<8x128xi32>
      %c128_i32 = arith.constant 128 : i32
      %21 = vector.broadcast %c128_i32 : i32 to vector<8x128xi32>
      %22 = arith.muli %19, %21 : vector<8x128xi32>
      %23 = vector.broadcast %2 : i32 to vector<8x128xi32>
      %24 = arith.addi %23, %22 : vector<8x128xi32>
      %25 = arith.addi %24, %20 : vector<8x128xi32>
      %c8_i32_8 = arith.constant 8 : i32
      %26 = vector.broadcast %c8_i32_8 : i32 to vector<8x128xi32>
      %27 = arith.cmpi slt, %25, %26 : vector<8x128xi32>
      %28 = math.absf %18 : vector<8x128xf32>
      %cst = arith.constant 1.000000e+00 : f32
      %29 = vector.broadcast %cst : f32 to vector<8x128xf32>
      %30 = arith.subf %28, %29 : vector<8x128xf32>
      %c8_i32_9 = arith.constant 8 : i32
      %31 = vector.broadcast %c8_i32_9 : i32 to vector<8x128xi32>
      %32 = arith.cmpi eq, %25, %31 : vector<8x128xi32>
      %cst_10 = arith.constant 1.000000e+00 : f32
      %33 = vector.broadcast %cst_10 : f32 to vector<8x128xf32>
      %34 = arith.subf %18, %33 : vector<8x128xf32>
      %c9_i32 = arith.constant 9 : i32
      %35 = vector.broadcast %c9_i32 : i32 to vector<8x128xi32>
      %36 = arith.cmpi eq, %25, %35 : vector<8x128xi32>
      %cst_11 = arith.constant 0xFF800000 : f32
      %37 = vector.broadcast %cst_11 : f32 to vector<8x128xf32>
      %38 = arith.select %36, %18, %37 : vector<8x128xi1>, vector<8x128xf32>
      %39 = arith.select %32, %34, %38 : vector<8x128xi1>, vector<8x128xf32>
      %40 = arith.select %27, %30, %39 : vector<8x128xi1>, vector<8x128xf32>
      %41 = vector.shape_cast %40 : vector<8x128xf32> to vector<1x8x128xf32>
      %cst_12 = arith.constant dense<0xFF800000> : vector<8x128xf32>
      %42 = vector.multi_reduction <maximumf>, %41, %cst_12 [0] : vector<1x8x128xf32> to vector<8x128xf32>
      %c0_13 = arith.constant 0 : index
      %c0_14 = arith.constant 0 : index
      %43 = vector.load %arg4[%c0_13, %c0_14] : memref<8x128xf32, #tpu.memory_space<vmem>>, vector<8x128xf32>
      %44 = arith.maximumf %43, %42 : vector<8x128xf32>
      %c0_15 = arith.constant 0 : index
      %c0_16 = arith.constant 0 : index
      %45 = vector.load %arg4[%c0_15, %c0_16] : memref<8x128xf32, #tpu.memory_space<vmem>>, vector<8x128xf32>
      tpu.vector_store %arg4[%c0_15, %c0_16], %44 {strides = array<i32>} : memref<8x128xf32, #tpu.memory_space<vmem>>, vector<8x128xf32>,
    } else {
    }
    %c0_i32_5 = arith.constant 0 : i32
    %15 = arith.cmpi eq, %arg1, %c0_i32_5 : i32
    %16 = arith.extui %15 : i1 to i32
    %c0_i32_6 = arith.constant 0 : i32
    %17 = arith.cmpi ne, %16, %c0_i32_6 : i32
    scf.if %17 {
      %c0 = arith.constant 0 : index
      %c0_7 = arith.constant 0 : index
      %18 = vector.load %arg4[%c0, %c0_7] : memref<8x128xf32, #tpu.memory_space<vmem>>, vector<8x128xf32>
      %cst = arith.constant dense<0xFF800000> : vector<128xf32>
      %19 = vector.multi_reduction <maximumf>, %18, %cst [0] : vector<8x128xf32> to vector<128xf32>
      %20 = vector.shape_cast %19 : vector<128xf32> to vector<1x128xf32>
      %cst_8 = arith.constant dense<0xFF800000> : vector<1xf32>
      %21 = vector.multi_reduction <maximumf>, %20, %cst_8 [1] : vector<1x128xf32> to vector<1xf32>
      %22 = vector.shape_cast %21 : vector<1xf32> to vector<1x1xf32>
      %23 = vector.shape_cast %22 : vector<1x1xf32> to vector<1x1x1xf32>
      %c0_9 = arith.constant 0 : index
      %c0_10 = arith.constant 0 : index
      %c0_11 = arith.constant 0 : index
      %24 = vector.load %arg3[%c0_9, %c0_10, %c0_11] : memref<1x1x1xf32, #tpu.memory_space<vmem>>, vector<1x1x1xf32>
      tpu.vector_store %arg3[%c0_9, %c0_10, %c0_11], %23 {strides = array<i32>} : memref<1x1x1xf32, #tpu.memory_space<vmem>>, vector<1x1x1xf32>,
    } else {
    }
    return
  }
  func.func @transform_0(%arg0: i32, %arg1: i32) -> (i32, i32) {
    %c1_i32 = arith.constant 1 : i32
    %0 = arith.muli %arg0, %c1_i32 : i32
    %1 = arith.addi %0, %arg1 : i32
    %c0_i32 = arith.constant 0 : i32
    %2 = arith.minsi %1, %c0_i32 : i32
    %c0_i32_0 = arith.constant 0 : i32
    %c0_i32_1 = arith.constant 0 : i32
    return %2, %c0_i32_0 : i32, i32
  }
  func.func @transform_1(%arg0: i32, %arg1: i32) -> (i32, i32, i32) {
    %c0_i32 = arith.constant 0 : i32
    %c0_i32_0 = arith.constant 0 : i32
    %c0_i32_1 = arith.constant 0 : i32
    return %arg0, %c0_i32, %c0_i32_0 : i32, i32, i32
  }
}

</mosaic_0001>

<bundles_post_ra>
// kernel: tpu_custom_call.1
= control target key start
LH: loop header
LB: loop body
LE: loop exit
PB: predicated region body
PF: predicated region fallthrough
CT: control target
= control target key end

     0   :  { %6 = vsyncpa [#allocation4], 0  ;;  %s207_s0 = inlined_call_operand.hbm [shape: f32[1,128], index: 0, kind: input, shape index: {}]   ;;  %s208_s1 = inlined_call_operand.hbm [shape: f32[1,1,1], index: 1, kind: output, shape index: {}]  }
   0x1   :  { %7 = vsyncpa [#allocation5], 0 }
   0x2   :  { %18 = vsyncadd [#allocation4], 112  ;;  %s169_s6 = smov [#allocation3]   ;;  %s121_s10 = scalar_lea.hbm %s207_s0, 16 }
   0x3   :  { %s22_s7 = sshll.u32 %s169_s6, 4  ;;  %p122_p0 = scmp.ne.s32.totalorder %s207_s0, %s121_s10  ;;  %s23_s7 = int_to_ptr.vmem [resolvable:$true] %s22_s7 }
   0x4   :  { %p125_p1 = scmp.lt.u32.totalorder %s121_s10, %s207_s0 }
   0x6   :  { %p127_p2 = pnand %p125_p1, %p122_p0 }
   0x8   :  { %130 = shalt.err (!%p127_p2)
}
   0x9   :  { %s131_s15 = scalar_lea.vmem %s23_s7, 16  ;;  %s135_s16 = scalar_lea.vmem %s23_s7, 128 }
   0xa   :  { %p132_p3 = scmp.ne.s32.totalorder %s23_s7, %s131_s15  ;;  %p136_p4 = scmp.lt.s32.totalorder %s23_s7, %s23_s7 }
   0xb   :  { %p137_p5 = scmp.lt.s32.totalorder %s135_s16, %s131_s15 }
   0xd   :  { %p138_p6 = por %p137_p5, %p136_p4 }
   0xf   :  { %p139_p7 = pnand %p138_p6, %p132_p3 }
  0x11   :  { %142 = shalt.err (!%p139_p7)
}
  0x12   :  { %s170_s17 = smov 16   ;;  %s171_s18 = smov 1  }
  0x13   :  { %28 = dma.hbm_to_vmem [thread:$0]  %s207_s0, 16, %s23_s7, [#allocation4], %s170_s17, %s170_s17, %s171_s18  }
  0x14   :  { %165 = dma.done.wait [#allocation4], 128  }
  0x15   :  { %166 = vsyncadd [#allocation4], 4294967168  ;;  %v63_v0 = vlaneseq  ;;  %v62_v5 = vld [vmem:[#allocation3] sm:$0xff]  ;;  %s172_s0 = smov [#allocation6]   ;;  %vm95_vm3 = vcmask 0  }
  0x16   :  { %v72_v6 = vand.u32 2147483647, %v62_v5  ;;  %v116_v7 = vadd.f32 -1.0, %v62_v5  ;;  %s103_s21 = sshll.u32 %s172_s0, 4  ;;  %s104_s21 = int_to_ptr.vmem [resolvable:$true] %s103_s21 }
  0x17   :  { %v64_v1 = vshrl.u32 %v63_v0, 7  ;;  %v66_v2 = vand.u32 127, %v63_v0  ;;  %s143_s22 = scalar_lea.vmem %s104_s21, 16  ;;  %s147_s23 = scalar_lea.vmem %s104_s21, 32 }
  0x18   :  { %v115_v8 = vadd.f32 -1.0, %v72_v6  ;;  %p144_p8 = scmp.ne.s32.totalorder %s104_s21, %s143_s22  ;;  %p148_p9 = scmp.lt.s32.totalorder %s104_s21, %s104_s21 }
  0x19   :  { %v67_v3 = vmul.u32 128, %v64_v1  ;;  %p149_p10 = scmp.lt.s32.totalorder %s147_s23, %s143_s22 }
  0x1b   :  { %v70_v4 = vadd.s32 %v67_v3, %v66_v2  ;;  %p150_p11 = por %p149_p10, %p148_p9 }
  0x1d   :  { %vm74_vm0 = vcmp.eq.s32.totalorder %v70_v4, 8  ;;  %vm71_vm1 = vcmp.lt.s32.totalorder %v70_v4, 8  ;;  %vm76_vm2 = vcmp.eq.s32.totalorder %v70_v4, 9  ;;  %p151_p12 = pnand %p150_p11, %p144_p8 }
  0x1e   :  { %v77_v9 = vsel %vm76_vm2, %v62_v5, -inf }
  0x1f   :  { %v78_v10 = vsel %vm74_vm0, %v116_v7, %v77_v9 }
  0x20   :  { %v79_v11 = vsel %vm71_vm1, %v115_v8, %v78_v10 }
  0x21   :  { %v87_v12 = vrot.slane %v79_v11, 4 }
  0x23   :  { %v88_v13 = vmax.f32 %v79_v11, %v87_v12 }
  0x25   :  { %v89_v14 = vrot.slane %v88_v13, 2 }
  0x27   :  { %v90_v15 = vmax.f32 %v88_v13, %v89_v14 }
  0x29   :  { %v91_v16 = vrot.slane %v90_v15, 1 }
  0x2b   :  { %v92_v17 = vmax.f32 %v90_v15, %v91_v16 }
  0x2d   :  { %93 = vmax.xlane.f32.xlu0 %v92_v17 }
  0xba   :  { %v94_v18 = vpop.xlane.xlu0 %93 }
  0xbb   :  { %96 = vst.msk [vmem:[#allocation6] sm:$0x1] %vm95_vm3, %v94_v18 }
  0xbc   :  { %154 = shalt.err (!%p151_p12)
}
  0xbd   :  { %s155_s26 = scalar_lea.hbm %s208_s1, 16 }
  0xbe   :  { %p156_p13 = scmp.ne.s32.totalorder %s208_s1, %s155_s26  ;;  %p159_p0 = scmp.lt.u32.totalorder %s155_s26, %s208_s1 }
  0xc0   :  { %p161_p1 = pnand %p159_p0, %p156_p13 }
  0xc2   :  { %164 = shalt.err (!%p161_p1)
}
  0xc3   :  { %106 = dma.vmem_to_hbm [thread:$0]  %s104_s21, 16, %s208_s1, [#allocation5]  }
  0xc4   :  { %167 = dma.done.wait [#allocation5], 16  }
  0xc5   :  { %168 = vsyncadd [#allocation5], 4294967280 }
  0xc6   :  { %110 = vsyncpa [#allocation4], 1 }
  0xc7   :  { %111 = vsyncpa [#allocation5], 1 }

</bundles_post_ra>
